<compile_context>
chip_gen: v7x
topology: tpu7x:2x2x1
jax: 0.10.0
libtpu: 0.0.40
codegen_flags: <defaults>
</compile_context>

<pallas_src>
import functools

import jax
import jax.numpy as jnp
from jax.experimental import pallas as pl
from jax.experimental.pallas import tpu as pltpu


# ----------------------------------------------------------------------------
# In-kernel helpers (traced inside the Pallas bodies)
# ----------------------------------------------------------------------------
def _mlp_tanh(h, wb_refs):
    """tanh MLP: tanh on all layers except the last (linear head)."""
    n_layers = len(wb_refs) // 2
    for i in range(n_layers):
        w = wb_refs[2 * i][...]
        b = wb_refs[2 * i + 1][...]
        h = jnp.dot(h, w, preferred_element_type=jnp.float32) + b
        if i < n_layers - 1:
            h = jnp.tanh(h)
    return h


def _masked_probs(logits, mask):
    """Masked softmax followed by torch.nan_to_num(..., 1/3901)."""
    ml = jnp.where(mask > 0, logits, jnp.float32(-jnp.inf))
    m = jnp.max(ml, axis=-1, keepdims=True)
    e = jnp.exp(ml - m)
    p = e / jnp.sum(e, axis=-1, keepdims=True)
    fill = jnp.float32(1.0 / 3901.0)
    p = jnp.where(jnp.isnan(p), fill, p)
    p = jnp.where(jnp.isinf(p), fill, p)
    return p


def _categorical_stats(p, action):
    """torch.distributions.Categorical(probs=p).log_prob(action) / .entropy()."""
    s = jnp.sum(p, axis=-1, keepdims=True)
    pn = p / s                                   # Categorical normalizes probs
    logpn = jnp.log(pn)
    bsz, adim = p.shape
    idx = jax.lax.broadcasted_iota(jnp.int32, (bsz, adim), 1)
    onehot = idx == action                       # action: (B, 1) int32
    logp = jnp.sum(jnp.where(onehot, logpn, 0.0), axis=-1, keepdims=True)
    clamped = jnp.maximum(logpn, jnp.finfo(jnp.float32).min)  # 0 * -inf -> 0
    ent = -jnp.sum(pn * clamped, axis=-1, keepdims=True)
    return logp, ent


# ----------------------------------------------------------------------------
# Kernel 1: fused shared GCN trunk (per-batch grid)
# ----------------------------------------------------------------------------
def _shared_kernel(adj_ref, x_ref, state_ref,
                   g1w_ref, g1b_ref, g2w_ref, g2b_ref,
                   spw_ref, spb_ref, o_ref):
    a = adj_ref[0]                                   # (N, N) row-normalized adj
    x = x_ref[0]                                     # (N, F)
    # GCN layer 1: LeakyReLU((A @ X) @ W1 + b1)
    h = jnp.dot(a, x, preferred_element_type=jnp.float32)
    h = jnp.dot(h, g1w_ref[...], preferred_element_type=jnp.float32) + g1b_ref[...]
    h = jnp.where(h > 0, h, 0.01 * h)
    # GCN layer 2: LeakyReLU((A @ H) @ W2 + b2)
    h = jnp.dot(a, h, preferred_element_type=jnp.float32)
    h = jnp.dot(h, g2w_ref[...], preferred_element_type=jnp.float32) + g2b_ref[...]
    h = jnp.where(h > 0, h, 0.01 * h)                # (N, E)
    # global (max || mean) pool over points + state projection, all in VMEM
    pooled = jnp.concatenate(
        [jnp.max(h, axis=0, keepdims=True), jnp.mean(h, axis=0, keepdims=True)],
        axis=-1)                                     # (1, 2E)
    sproj = jnp.dot(state_ref[0], spw_ref[...],
                    preferred_element_type=jnp.float32) + spb_ref[...]
    o_ref[0] = (pooled + sproj).astype(o_ref.dtype)


def shared_trunk(adj, x, state, g1, g2, sp):
    bsz, n, f = x.shape
    h1 = g1[0].shape[1]
    e = g2[0].shape[1]
    s = state.shape[1]
    feat = 2 * e
    out = pl.pallas_call(
        _shared_kernel,
        out_shape=jax.ShapeDtypeStruct((bsz, 1, feat), jnp.float32),
        grid=(bsz,),
        in_specs=[
            pl.BlockSpec((1, n, n), lambda i: (i, 0, 0)),
            pl.BlockSpec((1, n, f), lambda i: (i, 0, 0)),
            pl.BlockSpec((1, 1, s), lambda i: (i, 0, 0)),
            pl.BlockSpec((f, h1), lambda i: (0, 0)),
            pl.BlockSpec((1, h1), lambda i: (0, 0)),
            pl.BlockSpec((h1, e), lambda i: (0, 0)),
            pl.BlockSpec((1, e), lambda i: (0, 0)),
            pl.BlockSpec((s, feat), lambda i: (0, 0)),
            pl.BlockSpec((1, feat), lambda i: (0, 0)),
        ],
        out_specs=pl.BlockSpec((1, 1, feat), lambda i: (i, 0, 0)),
        compiler_params=pltpu.CompilerParams(dimension_semantics=("parallel",)),
    )(adj, x, state.reshape(bsz, 1, s),
      g1[0], g1[1].reshape(1, -1), g2[0], g2[1].reshape(1, -1),
      sp[0], sp[1].reshape(1, -1))
    return out.reshape(bsz, feat)


# ----------------------------------------------------------------------------
# Kernel 2: fused actor arm -> masked softmax -> Categorical log_prob/entropy
# (used in evaluate; probs never leave VMEM)
# ----------------------------------------------------------------------------
def _actor_eval_kernel(n_layers, feat_ref, mask_ref, act_ref, *refs):
    wb = refs[:2 * n_layers]
    logp_ref, ent_ref = refs[2 * n_layers:]
    logits = _mlp_tanh(feat_ref[...], wb)
    p = _masked_probs(logits, mask_ref[...])
    logp, ent = _categorical_stats(p, act_ref[...])
    logp_ref[...] = logp
    ent_ref[...] = ent


def actor_eval(feature, mask, action, layers):
    bsz = feature.shape[0]
    flat = []
    for w, b in layers:
        flat += [w, b.reshape(1, -1)]
    logp, ent = pl.pallas_call(
        functools.partial(_actor_eval_kernel, len(layers)),
        out_shape=(
            jax.ShapeDtypeStruct((bsz, 1), jnp.float32),
            jax.ShapeDtypeStruct((bsz, 1), jnp.float32),
        ),
    )(feature, mask.astype(jnp.float32),
      action.reshape(bsz, 1).astype(jnp.int32), *flat)
    return logp[:, 0], ent[:, 0]


# ----------------------------------------------------------------------------
# Kernel 3: fused actor arm -> masked softmax (probs out; used in act)
# ----------------------------------------------------------------------------
def _actor_probs_kernel(n_layers, feat_ref, mask_ref, *refs):
    wb = refs[:2 * n_layers]
    probs_ref = refs[2 * n_layers]
    logits = _mlp_tanh(feat_ref[...], wb)
    probs_ref[...] = _masked_probs(logits, mask_ref[...])


def actor_probs(feature, mask, layers):
    bsz = feature.shape[0]
    adim = layers[-1][0].shape[1]
    flat = []
    for w, b in layers:
        flat += [w, b.reshape(1, -1)]
    return pl.pallas_call(
        functools.partial(_actor_probs_kernel, len(layers)),
        out_shape=jax.ShapeDtypeStruct((bsz, adim), jnp.float32),
    )(feature, mask.astype(jnp.float32), *flat)


# ----------------------------------------------------------------------------
# Kernel 4: fused critic MLP
# ----------------------------------------------------------------------------
def _critic_kernel(n_layers, feat_ref, *refs):
    wb = refs[:2 * n_layers]
    out_ref = refs[2 * n_layers]
    out_ref[...] = _mlp_tanh(feat_ref[...], wb).astype(out_ref.dtype)


def critic_value(feature, layers):
    bsz = feature.shape[0]
    flat = []
    for w, b in layers:
        flat += [w, b.reshape(1, -1)]
    return pl.pallas_call(
        functools.partial(_critic_kernel, len(layers)),
        out_shape=jax.ShapeDtypeStruct((bsz, 1), jnp.float32),
    )(feature, *flat)


# ----------------------------------------------------------------------------
# Kernel 5: Categorical log_prob/entropy from given probs (act path)
# ----------------------------------------------------------------------------
def _categorical_kernel(p_ref, a_ref, logp_ref, ent_ref):
    logp, ent = _categorical_stats(p_ref[...], a_ref[...])
    logp_ref[...] = logp
    ent_ref[...] = ent


def categorical_eval(probs, action):
    bsz = probs.shape[0]
    logp, ent = pl.pallas_call(
        _categorical_kernel,
        out_shape=(
            jax.ShapeDtypeStruct((bsz, 1), jnp.float32),
            jax.ShapeDtypeStruct((bsz, 1), jnp.float32),
        ),
    )(probs, action.reshape(bsz, 1).astype(jnp.int32))
    return logp[:, 0], ent[:, 0]


# ----------------------------------------------------------------------------
# Plain-JAX glue: kNN graph construction (data-dependent gather/top-k)
# ----------------------------------------------------------------------------
# TODO(synk): kNN top-k + one-hot scatter stays in plain JAX (small dynamic
# gather with no clean Pallas equivalent); the GCN matmuls run in Pallas.
def knn_adjacency(x, k):
    # x: [B, N, F]
    n = x.shape[1]
    d2 = jnp.sum((x[:, :, None, :] - x[:, None, :, :]) ** 2, axis=-1)  # [B,N,N]
    _, idx = jax.lax.top_k(-d2, k)                                     # [B,N,k]
    adj = jnp.minimum(jax.nn.one_hot(idx, n, dtype=jnp.float32).sum(axis=2), 1.0)
    adj = adj + jnp.eye(n, dtype=jnp.float32)[None]
    adj = adj / jnp.sum(adj, axis=-1, keepdims=True)                   # row-norm
    return adj


# ----------------------------------------------------------------------------
# ActorCritic in JAX + Pallas
# ----------------------------------------------------------------------------
class ActorCriticPallas:
    def __init__(self, state_dim, action2_dim, actor_arm_dim_list,
                 critic_arm_dim_list, emb_dims, feature_dims, k, key):
        self.k = k
        self.emb_dims = emb_dims
        feat = emb_dims * 2

        def dense(key, din, dout):
            kw, kb = jax.random.split(key)
            w = 0.1 * jax.random.normal(kw, (din, dout), jnp.float32)
            b = 0.01 * jax.random.normal(kb, (dout,), jnp.float32)
            return w, b

        keys = jax.random.split(key, 16)
        # Shared GCN trunk
        self.g1 = dense(keys[0], feature_dims, 64)
        self.g2 = dense(keys[1], 64, emb_dims)
        self.state_proj = dense(keys[2], state_dim, feat)
        # Actor arm
        dims = [feat] + list(actor_arm_dim_list) + [action2_dim]
        self.actor = [dense(keys[3 + i], dims[i], dims[i + 1])
                      for i in range(len(dims) - 1)]
        # Critic arm
        dims = [feat] + list(critic_arm_dim_list) + [1]
        self.critic = [dense(keys[10 + i], dims[i], dims[i + 1])
                       for i in range(len(dims) - 1)]

    # Shared_Module_GCN.forward(x, state) — one fused Pallas kernel
    def shared_forward(self, x, state):
        adj = knn_adjacency(x, self.k)
        return shared_trunk(adj, x, state, self.g1, self.g2, self.state_proj)

    def act(self, key, x, state, mask):
        feature = self.shared_forward(x, state)
        probs = actor_probs(feature, mask, self.actor)
        # TODO(synk): Categorical sampling stays in plain JAX (stateless RNG).
        action = jax.random.categorical(
            key, jnp.log(jnp.maximum(probs, 1e-30)), axis=-1)
        logp, _ = categorical_eval(probs, action)
        return action, logp

    def evaluate(self, x, state, action2, mask):
        feature = self.shared_forward(x, state)
        logp, entropy = actor_eval(feature, mask, action2, self.actor)
        values = critic_value(feature, self.critic)
        return values, logp, entropy


# ----------------------------------------------------------------------------
if __name__ == "__main__":
    key = jax.random.PRNGKey(0)
    k_model, k_x, k_s, k_act = jax.random.split(key, 4)

    # Small, forward-consistent shapes.
    B, N, F = 2, 16, 4            # batch, points, feature_dims
    state_dim = 8
    emb_dims = 32
    action2_dim = 10
    knn = 4
    actor_arm_dim_list = [32, 32]
    critic_arm_dim_list = [32]

    model = ActorCriticPallas(state_dim, action2_dim, actor_arm_dim_list,
                              critic_arm_dim_list, emb_dims, F, knn, k_model)

    x = jax.random.normal(k_x, (B, N, F), jnp.float32)        # layout: [B, N, C]
    state = jax.random.normal(k_s, (B, state_dim), jnp.float32)
    mask = jnp.ones((B, action2_dim), jnp.float32).at[:, -2:].set(0.0)
    action2 = jnp.array([1, 3], dtype=jnp.int32)

    values, logp, entropy = model.evaluate(x, state, action2, mask)
    act_out, act_logp = model.act(k_act, x, state, mask)

    jax.block_until_ready((values, logp, entropy, act_out, act_logp))
    assert values.shape == (B, 1)
    assert logp.shape == (B,) and entropy.shape == (B,)
    assert act_out.shape == (B,) and act_logp.shape == (B,)
    assert bool(jnp.all(jnp.isfinite(values)))
    assert bool(jnp.all(jnp.isfinite(logp)))
    assert bool(jnp.all(jnp.isfinite(entropy)))
    assert bool(jnp.all(jnp.isfinite(act_logp)))
    print("KERNEL_OK")
</pallas_src>

<mosaic_0001>
module attributes {stable_mosaic.version = 11 : i64} {
  func.func @_shared_kernel(%arg0: i32, %arg1: memref<1x16x16xf32, #tpu.memory_space<vmem>>, %arg2: memref<1x16x4xf32, #tpu.memory_space<vmem>>, %arg3: memref<1x1x8xf32, #tpu.memory_space<vmem>>, %arg4: memref<4x64xf32, #tpu.memory_space<vmem>>, %arg5: memref<1x64xf32, #tpu.memory_space<vmem>>, %arg6: memref<64x32xf32, #tpu.memory_space<vmem>>, %arg7: memref<1x32xf32, #tpu.memory_space<vmem>>, %arg8: memref<8x64xf32, #tpu.memory_space<vmem>>, %arg9: memref<1x64xf32, #tpu.memory_space<vmem>>, %arg10: memref<1x1x64xf32, #tpu.memory_space<vmem>>) attributes {dimension_semantics = [#tpu.dimension_semantics<parallel>], iteration_bounds = array<i64: 2>, scalar_prefetch = 0 : i64, scratch_operands = 0 : i64, tpu.core_type = #tpu.core_type<tc>, window_params = [{transform_indices = @transform_0, window_bounds = array<i64: 1, 16, 16>}, {transform_indices = @transform_1, window_bounds = array<i64: 1, 16, 4>}, {transform_indices = @transform_2, window_bounds = array<i64: 1, 1, 8>}, {pipeline_mode = #tpu.pipeline_mode<synchronous>, transform_indices = @transform_3, window_bounds = array<i64: 4, 64>}, {pipeline_mode = #tpu.pipeline_mode<synchronous>, transform_indices = @transform_4, window_bounds = array<i64: 1, 64>}, {pipeline_mode = #tpu.pipeline_mode<synchronous>, transform_indices = @transform_5, window_bounds = array<i64: 64, 32>}, {pipeline_mode = #tpu.pipeline_mode<synchronous>, transform_indices = @transform_6, window_bounds = array<i64: 1, 32>}, {pipeline_mode = #tpu.pipeline_mode<synchronous>, transform_indices = @transform_7, window_bounds = array<i64: 8, 64>}, {pipeline_mode = #tpu.pipeline_mode<synchronous>, transform_indices = @transform_8, window_bounds = array<i64: 1, 64>}, {transform_indices = @transform_9, window_bounds = array<i64: 1, 1, 64>}]} {
    %c0 = arith.constant 0 : index
    %c0_0 = arith.constant 0 : index
    %c0_1 = arith.constant 0 : index
    %0 = vector.load %arg1[%c0, %c0_0, %c0_1] : memref<1x16x16xf32, #tpu.memory_space<vmem>>, vector<1x16x16xf32>
    %1 = vector.shape_cast %0 : vector<1x16x16xf32> to vector<16x16xf32>
    %c0_2 = arith.constant 0 : index
    %c0_3 = arith.constant 0 : index
    %c0_4 = arith.constant 0 : index
    %2 = vector.load %arg2[%c0_2, %c0_3, %c0_4] : memref<1x16x4xf32, #tpu.memory_space<vmem>>, vector<1x16x4xf32>
    %3 = vector.shape_cast %2 : vector<1x16x4xf32> to vector<16x4xf32>
    %cst = arith.constant dense<0.000000e+00> : vector<16x4xf32>
    %4 = tpu.matmul %1, %3, %cst {dimension_numbers = #tpu.dot_dimension_numbers<[1], [0], [0], [1], [0, 0, 1, 1], [], []>} : vector<16x16xf32>, vector<16x4xf32>, vector<16x4xf32> -> vector<16x4xf32>
    %c0_5 = arith.constant 0 : index
    %c0_6 = arith.constant 0 : index
    %5 = vector.load %arg4[%c0_5, %c0_6] : memref<4x64xf32, #tpu.memory_space<vmem>>, vector<4x64xf32>
    %cst_7 = arith.constant dense<0.000000e+00> : vector<16x64xf32>
    %6 = tpu.matmul %4, %5, %cst_7 {dimension_numbers = #tpu.dot_dimension_numbers<[1], [0], [0], [1], [0, 0, 1, 1], [], []>} : vector<16x4xf32>, vector<4x64xf32>, vector<16x64xf32> -> vector<16x64xf32>
    %c0_8 = arith.constant 0 : index
    %c0_9 = arith.constant 0 : index
    %7 = vector.load %arg5[%c0_8, %c0_9] : memref<1x64xf32, #tpu.memory_space<vmem>>, vector<1x64xf32>
    %8 = vector.broadcast %7 : vector<1x64xf32> to vector<16x64xf32>
    %9 = arith.addf %6, %8 : vector<16x64xf32>
    %cst_10 = arith.constant 0.000000e+00 : f32
    %10 = vector.broadcast %cst_10 : f32 to vector<16x64xf32>
    %11 = arith.cmpf ogt, %9, %10 : vector<16x64xf32>
    %cst_11 = arith.constant 0.00999999977 : f32
    %12 = vector.broadcast %cst_11 : f32 to vector<16x64xf32>
    %13 = arith.mulf %12, %9 : vector<16x64xf32>
    %14 = arith.select %11, %9, %13 : vector<16x64xi1>, vector<16x64xf32>
    %cst_12 = arith.constant dense<0.000000e+00> : vector<16x64xf32>
    %15 = tpu.matmul %1, %14, %cst_12 {dimension_numbers = #tpu.dot_dimension_numbers<[1], [0], [0], [1], [0, 0, 1, 1], [], []>} : vector<16x16xf32>, vector<16x64xf32>, vector<16x64xf32> -> vector<16x64xf32>
    %c0_13 = arith.constant 0 : index
    %c0_14 = arith.constant 0 : index
    %16 = vector.load %arg6[%c0_13, %c0_14] : memref<64x32xf32, #tpu.memory_space<vmem>>, vector<64x32xf32>
    %cst_15 = arith.constant dense<0.000000e+00> : vector<16x32xf32>
    %17 = tpu.matmul %15, %16, %cst_15 {dimension_numbers = #tpu.dot_dimension_numbers<[1], [0], [0], [1], [0, 0, 1, 1], [], []>} : vector<16x64xf32>, vector<64x32xf32>, vector<16x32xf32> -> vector<16x32xf32>
    %c0_16 = arith.constant 0 : index
    %c0_17 = arith.constant 0 : index
    %18 = vector.load %arg7[%c0_16, %c0_17] : memref<1x32xf32, #tpu.memory_space<vmem>>, vector<1x32xf32>
    %19 = vector.broadcast %18 : vector<1x32xf32> to vector<16x32xf32>
    %20 = arith.addf %17, %19 : vector<16x32xf32>
    %cst_18 = arith.constant 0.000000e+00 : f32
    %21 = vector.broadcast %cst_18 : f32 to vector<16x32xf32>
    %22 = arith.cmpf ogt, %20, %21 : vector<16x32xf32>
    %cst_19 = arith.constant 0.00999999977 : f32
    %23 = vector.broadcast %cst_19 : f32 to vector<16x32xf32>
    %24 = arith.mulf %23, %20 : vector<16x32xf32>
    %25 = arith.select %22, %20, %24 : vector<16x32xi1>, vector<16x32xf32>
    %cst_20 = arith.constant dense<0xFF800000> : vector<32xf32>
    %26 = vector.multi_reduction <maximumf>, %25, %cst_20 [0] : vector<16x32xf32> to vector<32xf32>
    %27 = vector.shape_cast %26 : vector<32xf32> to vector<1x32xf32>
    %cst_21 = arith.constant dense<0.000000e+00> : vector<32xf32>
    %28 = vector.multi_reduction <add>, %25, %cst_21 [0] : vector<16x32xf32> to vector<32xf32>
    %29 = vector.shape_cast %28 : vector<32xf32> to vector<1x32xf32>
    %cst_22 = arith.constant 1.600000e+01 : f32
    %30 = vector.broadcast %cst_22 : f32 to vector<1x32xf32>
    %31 = arith.divf %29, %30 : vector<1x32xf32>
    %32 = tpu.concatenate %27, %31 in 1 : vector<1x32xf32>, vector<1x32xf32> -> vector<1x64xf32>
    %c0_23 = arith.constant 0 : index
    %c0_24 = arith.constant 0 : index
    %c0_25 = arith.constant 0 : index
    %33 = vector.load %arg3[%c0_23, %c0_24, %c0_25] : memref<1x1x8xf32, #tpu.memory_space<vmem>>, vector<1x1x8xf32>
    %34 = vector.shape_cast %33 : vector<1x1x8xf32> to vector<1x8xf32>
    %c0_26 = arith.constant 0 : index
    %c0_27 = arith.constant 0 : index
    %35 = vector.load %arg8[%c0_26, %c0_27] : memref<8x64xf32, #tpu.memory_space<vmem>>, vector<8x64xf32>
    %cst_28 = arith.constant dense<0.000000e+00> : vector<1x64xf32>
    %36 = tpu.matmul %34, %35, %cst_28 {dimension_numbers = #tpu.dot_dimension_numbers<[1], [0], [0], [1], [0, 0, 1, 1], [], []>} : vector<1x8xf32>, vector<8x64xf32>, vector<1x64xf32> -> vector<1x64xf32>
    %c0_29 = arith.constant 0 : index
    %c0_30 = arith.constant 0 : index
    %37 = vector.load %arg9[%c0_29, %c0_30] : memref<1x64xf32, #tpu.memory_space<vmem>>, vector<1x64xf32>
    %38 = arith.addf %36, %37 : vector<1x64xf32>
    %39 = arith.addf %32, %38 : vector<1x64xf32>
    %c0_31 = arith.constant 0 : index
    %c0_32 = arith.constant 0 : index
    %c0_33 = arith.constant 0 : index
    %40 = vector.load %arg10[%c0_31, %c0_32, %c0_33] : memref<1x1x64xf32, #tpu.memory_space<vmem>>, vector<1x1x64xf32>
    %41 = vector.shape_cast %40 : vector<1x1x64xf32> to vector<1x64xf32>
    %42 = vector.shape_cast %39 : vector<1x64xf32> to vector<1x1x64xf32>
    tpu.vector_store %arg10[%c0_31, %c0_32, %c0_33], %42 {strides = array<i32>} : memref<1x1x64xf32, #tpu.memory_space<vmem>>, vector<1x1x64xf32>,
    return
  }
  func.func @transform_0(%arg0: i32) -> (i32, i32, i32) {
    %c0_i32 = arith.constant 0 : i32
    %c0_i32_0 = arith.constant 0 : i32
    %c0_i32_1 = arith.constant 0 : i32
    return %arg0, %c0_i32, %c0_i32_0 : i32, i32, i32
  }
  func.func @transform_1(%arg0: i32) -> (i32, i32, i32) {
    %c0_i32 = arith.constant 0 : i32
    %c0_i32_0 = arith.constant 0 : i32
    %c0_i32_1 = arith.constant 0 : i32
    return %arg0, %c0_i32, %c0_i32_0 : i32, i32, i32
  }
  func.func @transform_2(%arg0: i32) -> (i32, i32, i32) {
    %c0_i32 = arith.constant 0 : i32
    %c0_i32_0 = arith.constant 0 : i32
    %c0_i32_1 = arith.constant 0 : i32
    return %arg0, %c0_i32, %c0_i32_0 : i32, i32, i32
  }
  func.func @transform_3(%arg0: i32) -> (i32, i32) {
    %c0_i32 = arith.constant 0 : i32
    %c0_i32_0 = arith.constant 0 : i32
    %c0_i32_1 = arith.constant 0 : i32
    return %c0_i32, %c0_i32_0 : i32, i32
  }
  func.func @transform_4(%arg0: i32) -> (i32, i32) {
    %c0_i32 = arith.constant 0 : i32
    %c0_i32_0 = arith.constant 0 : i32
    %c0_i32_1 = arith.constant 0 : i32
    return %c0_i32, %c0_i32_0 : i32, i32
  }
  func.func @transform_5(%arg0: i32) -> (i32, i32) {
    %c0_i32 = arith.constant 0 : i32
    %c0_i32_0 = arith.constant 0 : i32
    %c0_i32_1 = arith.constant 0 : i32
    return %c0_i32, %c0_i32_0 : i32, i32
  }
  func.func @transform_6(%arg0: i32) -> (i32, i32) {
    %c0_i32 = arith.constant 0 : i32
    %c0_i32_0 = arith.constant 0 : i32
    %c0_i32_1 = arith.constant 0 : i32
    return %c0_i32, %c0_i32_0 : i32, i32
  }
  func.func @transform_7(%arg0: i32) -> (i32, i32) {
    %c0_i32 = arith.constant 0 : i32
    %c0_i32_0 = arith.constant 0 : i32
    %c0_i32_1 = arith.constant 0 : i32
    return %c0_i32, %c0_i32_0 : i32, i32
  }
  func.func @transform_8(%arg0: i32) -> (i32, i32) {
    %c0_i32 = arith.constant 0 : i32
    %c0_i32_0 = arith.constant 0 : i32
    %c0_i32_1 = arith.constant 0 : i32
    return %c0_i32, %c0_i32_0 : i32, i32
  }
  func.func @transform_9(%arg0: i32) -> (i32, i32, i32) {
    %c0_i32 = arith.constant 0 : i32
    %c0_i32_0 = arith.constant 0 : i32
    %c0_i32_1 = arith.constant 0 : i32
    return %arg0, %c0_i32, %c0_i32_0 : i32, i32, i32
  }
}

</mosaic_0001>

<bundles_post_ra>
// kernel: tpu_custom_call.1
= control target key start
LH: loop header
LB: loop body
LE: loop exit
PB: predicated region body
PF: predicated region fallthrough
CT: control target
= control target key end

     0   :  { %14 = vsyncpa [#allocation3], 0  ;;  %s1356_s0 = inlined_call_operand.vmem [shape: f32[2,16,16], index: 0, kind: input, shape index: {}]   ;;  %s1357_s1 = inlined_call_operand.vmem [shape: f32[2,16,4], index: 1, kind: input, shape index: {}]   ;;  %s1358_s2 = inlined_call_operand.vmem [shape: f32[2,1,8], index: 2, kind: input, shape index: {}]   ;;  %s1359_s3 = inlined_call_operand.vmem [shape: f32[4,64], index: 3, kind: input, shape index: {}]   ;;  %s1360_s4 = inlined_call_operand.vmem [shape: f32[1,64], index: 4, kind: input, shape index: {}]   ;;  %s1361_s5 = inlined_call_operand.vmem [shape: f32[64,32], index: 5, kind: input, shape index: {}]   ;;  %s1362_s6 = inlined_call_operand.vmem [shape: f32[1,32], index: 6, kind: input, shape index: {}]   ;;  %s1363_s7 = inlined_call_operand.vmem [shape: f32[8,64], index: 7, kind: input, shape index: {}]   ;;  %s1364_s8 = inlined_call_operand.vmem [shape: f32[1,64], index: 8, kind: input, shape index: {}]   ;;  %s1365_s9 = inlined_call_operand.hbm [shape: f32[2,1,64], index: 9, kind: output, shape index: {}]  }
   0x1   :  { %16 = vsyncpa [#allocation3 + $0x1], 0  ;;  %s1198_s30 = smov 0   ;;  %s1200_s10 = smov 0  }
   0x2   :  { %s1202_s11 = smov 0   ;;  %s1204_s12 = smov 0  }
   0x3 LB: > { %s1219_s13 = sadd.s32 4294967295, %s1142_s12   ;;  %s923_s14 = sadd.s32 4294967294, %s1142_s12   ;;  %s1142_s12 = sphi %s1204_s12, %s1371_s12   ;;  %s1138_s11 = sphi %s1202_s11, %s1370_s11   ;;  %s1134_s10 = sphi %s1200_s10, %s1369_s10   ;;  %s1130_s30 = sphi %s1198_s30, %s1368_s30  }
   0x4   : > { %s1223_s15 = sadd.s32 1, %s1142_s12   ;;  %s233_s16 = sadd.s32 1, %s1138_s11 }
   0x5   : > { %s230_s17 = ssub.s32 %s1142_s12, %s1223_s15  ;;  %p243_p0 = scmp.ne.s32.totalorder %s1138_s11, %s1134_s10 }
   0x6   : > { %p231_p1 = scmp.eq.s32.totalorder %s230_s17, 0  ;;  %p244_p2 = scmp.eq.s32.totalorder %s1219_s13, 1 }
   0x7   : > { %p249_p3 = scmp.ne.s32.totalorder %s1134_s10, %s1130_s30  ;;  %p250_p4 = scmp.eq.s32.totalorder %s923_s14, 1 }
   0x8   : > { %s1234_s18 = scalar_select %p231_p1, %s1138_s11, %s233_s16  }
   0x9   : > { %p1236_p5 = por %p244_p2, %p243_p0  ;;  %p1240_p6 = por %p250_p4, %p249_p3 }
   0xa   : > { %p926_p7 = scmp.ge.s32.totalorder %s1142_s12, 1  ;;  %p308_p8 = scmp.lt.s32.totalorder %s1142_s12, 3 }
   0xc   : > { %p309_p9 = pnand %p926_p7, %p308_p8 }
   0xd   : > { %p351_p10 = scmp.lt.s32.totalorder (!%p309_p9), %s1219_s13, 1  ;;  %vm368_vm0 = vcmask (!%p309_p9), 130048   ;;  %v450_v4 = vld [vmem:[%s1359_s3] sm:$0xf] (!%p309_p9)  ;;  %vm465_vm1 = vcmask (!%p309_p9), 1043456   ;;  %vm458_vm2 = vcmask (!%p309_p9), 31744  }
   0xe   : > { %312 = sbr.rel (%p309_p9) target bundleno = 1051 (0x41b), region = 56  ;;  %v625_v8 = vld [vmem:[%s1361_s5] sm:$0xff] (!%p309_p9)  ;;  %v626_v9 = vld [vmem:[%s1361_s5 + $0x8] sm:$0xff] (!%p309_p9)  ;;  %v627_v10 = vld [vmem:[%s1361_s5 + $0x10] sm:$0xff] (!%p309_p9)  ;;  %vm757_vm5 = vcmask (!%p309_p9), 64512   ;;  %v1144_v31 = vmov (!%p309_p9), 0.0  }
   0xf   : > { %v1022_v11 = vpack.c.bf16 (!%p309_p9), %v626_v9, %v625_v8  ;;  %v628_v12 = vld [vmem:[%s1361_s5 + $0x18] sm:$0xff] (!%p309_p9)  ;;  %v629_v14 = vld [vmem:[%s1361_s5 + $0x20] sm:$0xff] (!%p309_p9)  ;;  %v630_v15 = vld [vmem:[%s1361_s5 + $0x28] sm:$0xff] (!%p309_p9)  ;;  %vm1145_vm6 = vmmov (!%p309_p9), 0   ;;  %vm640_vm7 = vcmask (!%p309_p9), 523264   ;;  %vm728_vm9 = vcmask (!%p309_p9), 261120  }
  0x10   : > { %v1026_v13 = vpack.c.bf16 (!%p309_p9), %v628_v12, %v627_v10  ;;  %v1030_v16 = vpack.c.bf16 (!%p309_p9), %v630_v15, %v629_v14  ;;  %v631_v17 = vld [vmem:[%s1361_s5 + $0x30] sm:$0xff] (!%p309_p9)  ;;  %v632_v18 = vld [vmem:[%s1361_s5 + $0x38] sm:$0xff] (!%p309_p9)  ;;  %v933_v20 = vld [vmem:[%s1360_s4] ss:$0 sm:$0xff] (!%p309_p9)  ;;  %s349_s23 = sand.u32 (!%p309_p9), 1, %s1134_s10   ;;  %s943_s26 = sshll.u32 (!%p309_p9), %s1219_s13, 4 }
  0x11   : > { %1023 = vmatprep.subr.bf16.mxu0 (!%p309_p9), %v1022_v11  ;;  %v1034_v19 = vpack.c.bf16 (!%p309_p9), %v632_v18, %v631_v17  ;;  %v755_v30 = vld [vmem:[%s1363_s7] sm:$0xff] (!%p309_p9)  ;;  %s350_s27 = scalar_lea.vmem (!%p309_p9), [#allocation2], %s349_s23  ;;  %vm832_vm11 = vcmask (!%p309_p9), 516096   ;;  %s835_s17 = scalar_lea.sflag (!%p309_p9), [#allocation3], %s349_s23 }
  0x12   : > { %1025 = vmatpush3.bf16.msra.mxu0 (!%p309_p9), %v1022_v11  ;;  %v939_v37 = vld [vmem:[%s1362_s6] ss:$0 sm:$0xff] (!%p309_p9) }
  0x13   : > { %1027 = vmatprep.subr.bf16.mxu0 (!%p309_p9), %v1026_v13  ;;  %v756_v63 = vld [vmem:[%s1364_s8] sm:$0x1] (!%p309_p9) }
  0x15   : > { %s1248_s21 = scalar_select %p351_p10, %s1219_s13, 1 }
  0x16   : > { %1029 = vmatpush3.bf16.msra.mxu0 %v1026_v13 }
  0x17   : > { %s946_s22 = sshll.u32 %s1248_s21, 4  ;;  %1031 = vmatprep.subr.bf16.mxu0 %v1030_v16  ;;  %s363_s16 = scalar_lea.vmem %s1358_s2, %s1248_s21 }
  0x18   : > { %s360_s25 = scalar_lea.vmem %s1357_s1, %s946_s22  ;;  %s355_s28 = scalar_lea.vmem %s1356_s0, %s946_s22  ;;  %v754_v32 = vld [vmem:[%s363_s16] sm:$0x1] }
  0x19   : > { %v366_v0 = vld [vmem:[%s360_s25] sm:$0xff]  ;;  %v367_v1 = vld [vmem:[%s360_s25 + $0x8] sm:$0xff]  ;;  %s1146_s21 = smov 32   ;;  %s1314_s16 = scalar_lea.hbm %s1365_s9, %s943_s26 }
  0x1a   : > { %v364_v2 = vld [vmem:[%s355_s28] sm:$0xff]  ;;  %v1014_v3 = vpack.c.bf16 %v367_v1, %v366_v0  ;;  %v365_v5 = vld [vmem:[%s355_s28 + $0x8] sm:$0xff]  ;;  %1033 = vmatpush3.bf16.msra.mxu0 %v1030_v16  ;;  %s847_s28 = sshll.u32 %s350_s27, 4  ;;  %s1147_s22 = smov [#allocation2]   ;;  %s1316_s28 = int_to_ptr.vmem [resolvable:$true] %s847_s28 }
  0x1b   : > { %975 = vmatprep.mubr.msk.f32.mxu1 %vm368_vm0, %v364_v2  ;;  %1035 = vmatprep.subr.bf16.mxu0 %v1034_v19  ;;  %s1080_s13 = scalar_lea.vmem %s1316_s28, 16 }
  0x1c   : > { %1015 = vmatprep.subr.bf16.mxu1 %v1014_v3  ;;  %p1081_p11 = scmp.ne.s32.totalorder %s1316_s28, %s1080_s13 }
  0x1d   : > { %1017 = vmatpush3.bf16.msra.mxu1 %v1014_v3 }
  0x1e   : > { %978 = vmatprep.subr.msk.mxu1 %vm465_vm1, %v450_v4  ;;  %1037 = vmatpush3.bf16.msra.mxu0 %v1034_v19  ;;  %p1082_p12 = pnand %p1081_p11, %p1236_p5 }
  0x20   : > { %976 = vmatmul.mubr.msk.f32.vlgmr.msra.gmra.mrb[0].mxu1 %vm368_vm0, %v365_v5  ;;  %p1083_p13 = pneg %p1082_p12 }
  0x21   : > { %979 = vmatpush3.msk.msra.mxu1 %vm465_vm1, %v450_v4 }
  0xf3   : > { %v977_v6 = vpop.f32.mrb[0].mxu1 }
  0xf4   : > { %v441_v7 = vpop.f32.mrb[1].mxu1 }
  0xf5   : > { %980 = vmatprep.mubr.msk.f32.mxu1 %vm458_vm2, %v441_v7 }
  0xf6   : > { %981 = vmatmul.mubr.msk.f32.vlgmr.msra.gmra.mrb[2].mxu1 %vm458_vm2, %v977_v6 }
  0xf7   : > { %987 = vmatprep.mubr.msk.f32.mxu1 %vm368_vm0, %v364_v2 }
 0x1c9   : > { %v982_v21 = vpop.f32.mrb[2].mxu1 }
 0x1ca   : > { %v541_v22 = vadd.f32 %v982_v21, %v933_v20  ;;  %v535_v23 = vpop.f32.mrb[3].mxu1 }
 0x1cb   : > { %v536_v24 = vadd.f32 %v933_v20, %v535_v23 }
 0x1cc   : > { %vm545_vm3 = vcmp.gt.f32.partialorder %v541_v22, 0.0  ;;  %v547_v25 = vmul.f32 0.01, %v541_v22 }
 0x1cd   : > { %vm544_vm4 = vcmp.gt.f32.partialorder %v536_v24, 0.0  ;;  %v546_v26 = vmul.f32 0.01, %v536_v24 }
 0x1ce   : > { %v549_v27 = vsel %vm545_vm3, %v541_v22, %v547_v25 }
 0x1cf   : > { %v548_v28 = vsel %vm544_vm4, %v536_v24, %v546_v26 }
 0x1d0   : > { %v1018_v29 = vpack.c.bf16 %v549_v27, %v548_v28 }
 0x1d2   : > { %1019 = vmatprep.subr.bf16.mxu1 %v1018_v29 }
 0x1d3   : > { %1021 = vmatpush3.bf16.msra.mxu1 %v1018_v29 }
 0x1d4   : > { %1009 = vmatprep.subr.mxu1 %v1144_v31 }
 0x1d6   : > { %988 = vmatmul.mubr.msk.f32.vlgmr.msra.gmra.mrb[4].mxu1 %vm368_vm0, %v365_v5 }
 0x1d7   : > { %1011 = vmatprep.mubr.msk.f32.mxu1 %vm1145_vm6, %v1144_v31  ;;  %1010 = vmatpush3.msra.mxu1 %v755_v30 }
 0x1da   : > { %1012 = vmatmul.mubr.msk.f32.vlgmr.msra.gmra.mrb[6].mxu1 %vm757_vm5, %v754_v32 }
 0x2a9   : > { %v989_v33 = vpop.f32.mrb[4].mxu1 }
 0x2aa   : > { %v616_v34 = vpop.f32.mrb[5].mxu1 }
 0x2ab   : > { %1006 = vmatprep.mubr.msk.f32.mxu0 %vm640_vm7, %v616_v34 }
 0x2ac   : > { %1007 = vmatmul.mubr.msk.f32.vlgmr.msra.gmra.mrb[0].mxu0 %vm640_vm7, %v989_v33 }
 0x2ad   : > { %v827_v35 = vpop.f32.mrb[6].mxu1 }
 0x2ae   : > { %v1013_v36 = vpop.f32.mrb[7].mxu1  ;;  %v828_v1 = vadd.f32 %v827_v35, %v756_v63 }
 0x37f   : > { %v1008_v38 = vpop.f32.mrb[0].mxu0 }
 0x380   : > { %v719_v39 = vadd.f32 %v1008_v38, %v939_v37  ;;  %v713_v40 = vpop.f32.mrb[1].mxu0 }
 0x381   : > { %v714_v41 = vadd.f32 %v939_v37, %v713_v40 }
 0x382   : > { %vm723_vm8 = vcmp.gt.f32.partialorder %v719_v39, 0.0  ;;  %v725_v42 = vmul.f32 0.01, %v719_v39 }
 0x383   : > { %vm722_vm10 = vcmp.gt.f32.partialorder %v714_v41, 0.0  ;;  %v724_v43 = vmul.f32 0.01, %v714_v41 }
 0x384   : > { %v727_v44 = vsel %vm723_vm8, %v719_v39, %v725_v42 }
 0x385   : > { %v730_v45 = vsel %vm728_vm9, %v727_v44, -inf  ;;  %v739_v46 = vsel %vm728_vm9, %v727_v44, 0.0  ;;  %v726_v47 = vsel %vm722_vm10, %v714_v41, %v724_v43 }
 0x386   : > { %v729_v48 = vsel %vm728_vm9, %v726_v47, -inf  ;;  %v738_v49 = vsel %vm728_vm9, %v726_v47, 0.0 }
 0x387   : > { %v731_v50 = vmax.f32 %v729_v48, %v730_v45  ;;  %v740_v51 = vadd.f32 %v739_v46, %v738_v49 }
 0x389   : > { %v741_v52 = vrot.slane %v740_v51, 4  ;;  %v732_v59 = vrot.slane %v731_v50, 4 }
 0x38b   : > { %v742_v53 = vadd.f32 %v741_v52, %v740_v51  ;;  %v733_v60 = vmax.f32 %v731_v50, %v732_v59 }
 0x38d   : > { %v743_v54 = vrot.slane %v742_v53, 2  ;;  %v734_v61 = vrot.slane %v733_v60, 2 }
 0x38f   : > { %v744_v55 = vadd.f32 %v743_v54, %v742_v53  ;;  %v735_v62 = vmax.f32 %v733_v60, %v734_v61 }
 0x391   : > { %v745_v56 = vrot.slane %v744_v55, 1  ;;  %v736_v0 = vrot.slane %v735_v62, 1 }
 0x393   : > { %v746_v57 = vadd.f32 %v745_v56, %v744_v55  ;;  %v737_v2 = vmax.f32 %v735_v62, %v736_v0 }
 0x395   : > { %v748_v58 = vmul.f32 0.0625, %v746_v57 }
 0x397   : > { %750 = vrot.lane.b32.xlu0 %v748_v58, %s1146_s21  ;;  %s1084_s21 = sshll.u32 %s1147_s22, 4  ;;  %s1085_s21 = int_to_ptr.vmem [resolvable:$false] %s1084_s21 }
 0x398   : > { %s1086_s24 = scalar_lea.vmem %s1085_s21, 32  ;;  %p1087_p0 = scmp.lt.s32.totalorder %s1316_s28, %s1085_s21 }
 0x399   : > { %p1088_p1 = scmp.lt.s32.totalorder %s1086_s24, %s1080_s13 }
 0x39b   : > { %p1089_p2 = por %p1088_p1, %p1087_p0 }
 0x39d   : > { %p1090_p3 = pnand %p1089_p2, %p1083_p13 }
 0x409   : > { %v751_v3 = vpop.permute.xlu0 %750 }
 0x40a   : > { %v753_v4 = vsel %vm728_vm9, %v737_v2, %v751_v3 }
 0x40b   : > { %v831_v5 = vadd.f32 %v828_v1, %v753_v4 }
 0x40d   : > { %833 = vst.msk [vmem:[%s350_s27] sm:$0x1] %vm832_vm11, %v831_v5 }
 0x40e   : > { %1093 = shalt.err (!%p1090_p3)
}
 0x40f   : > { %s1094_s23 = scalar_lea.hbm %s1314_s16, 16  ;;  %s1098_s27 = scalar_lea.hbm %s1365_s9, 32 }
 0x410   : > { %p1095_p4 = scmp.ne.s32.totalorder %s1314_s16, %s1094_s23  ;;  %p1099_p9 = scmp.lt.u32.totalorder %s1314_s16, %s1365_s9 }
 0x411   : > { %p1100_p10 = scmp.lt.u32.totalorder %s1098_s27, %s1094_s23  ;;  %p1102_p12 = scmp.lt.u32.totalorder %s1094_s23, %s1314_s16 }
 0x412   : > { %p1096_p7 = pnand %p1095_p4, %p1236_p5 }
 0x413   : > { %p1101_p11 = por %p1100_p10, %p1099_p9 }
 0x414   : > { %p1097_p8 = pneg %p1096_p7 }
 0x415   : > { %p1103_p13 = por %p1102_p12, %p1101_p11 }
 0x417   : > { %p1104_p0 = pnand %p1103_p13, %p1097_p8 }
 0x419   : > { %1107 = shalt.err (!%p1104_p0)
}
 0x41a   : > { %1038 = dma.vmem_to_hbm [thread:$0]  (%p1236_p5), %s1316_s28, 16, %s1314_s16, %s835_s17  }
 0x41b PF: > { %p1044_p1 = scmp.ge.s32.totalorder %s1142_s12, 2  ;;  %s859_s13 = sand.u32 1, %s1130_s30  }
 0x41c   : > { %s860_s22 = scalar_lea.sflag [#allocation3], %s859_s13 }
 0x41d   : > { %p1041_p2 = pnand %p1044_p1, %p1240_p6 }
 0x41f   : > { %1125 = dma.done.wait (!%p1041_p2), %s860_s22, 16  }
 0x420   : > { %1127 = vsyncadd (!%p1041_p2), %s860_s22, 4294967280  ;;  %p19_p3 = scmp.ge.s32.totalorder %s1223_s15, 4   ;;  %s1368_s30 = smov %s1134_s10 }
 0x421   : > { %s1369_s10 = smov %s1138_s11  ;;  %s1370_s11 = smov %s1234_s18 }
 0x422   : > { %s1371_s12 = smov %s1223_s15  ;;  %21 = sbr.rel (!%p19_p3) target bundleno = 3 (0x3), region = 97 }
 0x429   :  { %864 = vsyncpa [#allocation3], 1 }
 0x42a   :  { %866 = vsyncpa [#allocation3 + $0x1], 1 }

</bundles_post_ra>
